<compile_context>
chip_gen: v6e
topology: v6e:2x2x1
jax: 0.10.0
libtpu: 0.0.40
codegen_flags: <defaults>
</compile_context>

<pallas_src>
import functools

import jax
import jax.numpy as jnp
from jax import lax
from jax.experimental import pallas as pl
from jax.experimental.pallas import tpu as pltpu


# ----------------------------------------------------------------------------------------------
# Kernel (feature-major: features on sublanes, batch on lanes)
# ----------------------------------------------------------------------------------------------
def _flat_residual_kernel(
    xa_ref, xv_ref,
    wa1r_ref, ba1r_ref,      # (adim+rank, adim), (adim+rank, 1)   fused [wa1 | war]^T
    wa2_ref, ba2_ref,        # (adim, adim), (adim, 1)
    wa3ra_ref, ba3ra_ref,    # (adim, adim+rank), (adim, 1)        fused [wa3 ; wra]^T, bias (ba3+bra)^T
    wv1r_ref,                # (vdim+rank, vdim)                   fused [wv1 | wvr]^T
    wv2_ref,                 # (vdim, vdim)
    wv3rv_ref,               # (vdim, vdim+rank)                   fused [wv3 ; wrv]^T
    oa_ref, ov_ref,
    *, adim, vdim,
):
    xa = xa_ref[...].astype(jnp.float32)     # (adim, TB)
    xv = xv_ref[...].astype(jnp.float32)     # (3, vdim, TB)

    wa1r, ba1r = wa1r_ref[...], ba1r_ref[...]
    wa2, ba2 = wa2_ref[...], ba2_ref[...]
    wa3ra, ba3ra = wa3ra_ref[...], ba3ra_ref[...]
    wv1r, wv2, wv3rv = wv1r_ref[...], wv2_ref[...], wv3rv_ref[...]

    def leaky(x):
        return jnp.where(x >= 0, x, 0.2 * x)

    def dot(w, x):
        return jnp.dot(w, x, preferred_element_type=jnp.float32)

    def vdot(w, v):
        # Per-coordinate channel mixing: (Cout, Cin) @ (3, Cin, TB) -> (3, Cout, TB).
        # Leading-dim indexing v[c] is a free row-block view; N = TB stays lane-dense.
        return jnp.stack([dot(w, v[c]) for c in range(3)], axis=0)

    def vec_root_s(v):
        # v: (3, C, TB); |v|^2 over the leading coordinate axis — pure VPU, no lane movement.
        s = jnp.sum(v * v, axis=0, keepdims=True)            # (1, C, TB)
        return v * lax.rsqrt(jnp.sqrt(1.0 + s))              # v * (1 + |v|^2)^(-1/4)

    # ---- fused first layers of both branches + low-rank projections
    ha = dot(wa1r, xa) + ba1r                                # (adim+rank, TB)
    h1 = leaky(ha[:adim, :])                                 # scalar branch layer 1
    a_r = ha[adim:, :]                                       # ScalVec: a -> rank   (rank, TB)

    hv = vdot(wv1r, xv)                                      # (3, vdim+rank, TB)
    g1 = vec_root_s(hv[:, :vdim, :])                         # vector branch layer 1
    v_r = hv[:, vdim:, :]                                    # ScalVec: v -> rank   (3, rank, TB)

    # ---- middle layers
    h2 = leaky(dot(wa2, h1) + ba2)                           # (adim, TB)
    g2 = vec_root_s(vdot(wv2, g1))                           # (3, vdim, TB)

    # ---- ScalVecProducts intermediates (pure VPU)
    vv = jnp.sum(v_r * v_r, axis=0)                          # (rank, TB)    <v_r, v_r>
    sv = a_r[None, :, :] * v_r                               # (3, rank, TB)

    # ---- fused output layers (sublane-aligned concats, single dot each)
    ya_pa = dot(wa3ra, jnp.concatenate([h2, vv], axis=0)) + ba3ra        # (adim, TB)
    yv_pv = vdot(wv3rv, jnp.concatenate([g2, sv], axis=1))               # (3, vdim, TB)

    oa_ref[...] = (xa + 0.5 * ya_pa).astype(oa_ref.dtype)
    ov_ref[...] = (xv + (1.0 / 20.0) * yv_pv).astype(ov_ref.dtype)


# ----------------------------------------------------------------------------------------------
# Wrapper-side weight fusion (do once, outside the per-call jitted path)
# ----------------------------------------------------------------------------------------------
def prepare_params(p):
    """Fuse & transpose weights to (out, in) for the feature-major kernel."""
    return {
        "wa1r_T": jnp.concatenate([p["wa1"].T, p["war"].T], axis=0),   # (adim+rank, adim)
        "ba1r_T": jnp.concatenate([p["ba1"].T, p["bar"].T], axis=0),   # (adim+rank, 1)
        "wa2_T": p["wa2"].T,                                           # (adim, adim)
        "ba2_T": p["ba2"].T,                                           # (adim, 1)
        "wa3ra_T": jnp.concatenate([p["wa3"].T, p["wra"].T], axis=1),  # (adim, adim+rank)
        "ba3ra_T": (p["ba3"] + p["bra"]).T,                            # (adim, 1)
        "wv1r_T": jnp.concatenate([p["wv1"].T, p["wvr"].T], axis=0),   # (vdim+rank, vdim)
        "wv2_T": p["wv2"].T,                                           # (vdim, vdim)
        "wv3rv_T": jnp.concatenate([p["wv3"].T, p["wrv"].T], axis=1),  # (vdim, vdim+rank)
    }


def _choose_tb(B, tb):
    if B <= 128 or tb >= B:
        return B                                    # single full block (last dim == array dim OK)
    return max(128, (min(tb, B) // 128) * 128)      # lane-dense tile, ragged tail handled by Pallas


def flat_residual_feature_major(x_a_t, x_v_t, fused, *, tb=2048):
    """Kernel-native layouts: x_a_t (adim, B), x_v_t (3, vdim, B).

    Use this entry point between chained FlatResidual blocks to skip the HBM transposes.
    """
    adim, B = x_a_t.shape
    vdim = x_v_t.shape[1]
    rank = fused["wa1r_T"].shape[0] - adim

    TB = _choose_tb(B, tb)
    grid = (pl.cdiv(B, TB),)

    weight_args = (fused["wa1r_T"], fused["ba1r_T"], fused["wa2_T"], fused["ba2_T"],
                   fused["wa3ra_T"], fused["ba3ra_T"], fused["wv1r_T"], fused["wv2_T"],
                   fused["wv3rv_T"])

    def const_spec(arr):
        # Full-array block, same block every step -> stays resident in VMEM, no re-DMA.
        return pl.BlockSpec(arr.shape, lambda i, _nd=arr.ndim: (0,) * _nd)

    in_specs = (
        [pl.BlockSpec((adim, TB), lambda i: (0, i)),
         pl.BlockSpec((3, vdim, TB), lambda i: (0, 0, i))]
        + [const_spec(w) for w in weight_args]
    )
    out_specs = (
        pl.BlockSpec((adim, TB), lambda i: (0, i)),
        pl.BlockSpec((3, vdim, TB), lambda i: (0, 0, i)),
    )

    # VMEM budget derived from the tile footprint (double-buffered I/O + f32 intermediates),
    # clamped so the limit stays safe on v7x's 64 MiB per-TC VMEM.
    x_itemsize = max(x_a_t.dtype.itemsize, x_v_t.dtype.itemsize)
    io_bytes = 4 * TB * (adim + 3 * vdim) * x_itemsize                     # in+out, double-buffered
    interm_bytes = 4 * TB * (8 * (adim + rank) + 24 * (vdim + rank))       # generous f32 live set
    weight_bytes = 2 * sum(int(w.size) * w.dtype.itemsize for w in weight_args)
    vmem_limit = int(min(max(io_bytes + interm_bytes + weight_bytes + (8 << 20), 32 << 20),
                         48 << 20))

    # Advisory cost estimate for the XLA scheduler.
    flops = (2 * B * (adim * (adim + rank) + adim * adim + (adim + rank) * adim)
             + 2 * 3 * B * (vdim * (vdim + rank) + vdim * vdim + (vdim + rank) * vdim))
    bytes_accessed = (x_itemsize * (2 * B * adim + 2 * 3 * B * vdim)
                      + sum(int(w.size) * w.dtype.itemsize for w in weight_args))
    transcendentals = 4 * B * vdim

    kernel = functools.partial(_flat_residual_kernel, adim=adim, vdim=vdim)

    out_a_t, out_v_t = pl.pallas_call(
        kernel,
        out_shape=(
            jax.ShapeDtypeStruct((adim, B), x_a_t.dtype),
            jax.ShapeDtypeStruct((3, vdim, B), x_v_t.dtype),
        ),
        grid=grid,
        in_specs=in_specs,
        out_specs=out_specs,
        compiler_params=pltpu.CompilerParams(
            dimension_semantics=("parallel",),
            vmem_limit_bytes=vmem_limit,
        ),
        cost_estimate=pl.CostEstimate(
            flops=int(flops),
            transcendentals=int(transcendentals),
            bytes_accessed=int(bytes_accessed),
        ),
    )(x_a_t, x_v_t, *weight_args)

    return out_a_t, out_v_t


def flat_residual(x_a, x_v, fused, *, tb=2048):
    """PyTorch-style layouts: x_a (B, adim), x_v (B, vdim, 3). `fused` = prepare_params(params)."""
    x_a_t = x_a.T                                            # (adim, B)
    x_v_t = jnp.transpose(x_v, (2, 1, 0))                    # (3, vdim, B)
    oa_t, ov_t = flat_residual_feature_major(x_a_t, x_v_t, fused, tb=tb)
    return oa_t.T, jnp.transpose(ov_t, (2, 1, 0))            # back to (B, adim), (B, vdim, 3)


# ----------------------------------------------------------------------------------------------
# Pure-JAX reference (same reconstructed semantics, PyTorch layouts) + param init
# ----------------------------------------------------------------------------------------------
def reference_flat_residual(x_a, x_v, p):
    leaky = lambda x: jnp.where(x >= 0, x, 0.2 * x)
    veclin = lambda v, w: jnp.einsum("bic,io->boc", v, w)

    def vroot(v):
        s = jnp.sum(v * v, axis=-1, keepdims=True)
        return v * lax.rsqrt(jnp.sqrt(1.0 + s))

    h = leaky(x_a @ p["wa1"] + p["ba1"])
    h = leaky(h @ p["wa2"] + p["ba2"])
    y_a = h @ p["wa3"] + p["ba3"]

    g = vroot(veclin(x_v, p["wv1"]))
    g = vroot(veclin(g, p["wv2"]))
    y_v = veclin(g, p["wv3"])

    a_r = x_a @ p["war"] + p["bar"]
    v_r = veclin(x_v, p["wvr"])
    vv = jnp.sum(v_r * v_r, axis=-1)
    p_a = vv @ p["wra"] + p["bra"]
    sv = a_r[:, :, None] * v_r
    p_v = veclin(sv, p["wrv"])

    return x_a + (y_a + p_a) / 2.0, x_v + (y_v + p_v) / 20.0


def init_params(key, adim, vdim, rank):
    ks = jax.random.split(key, 16)

    def w(k, ci, co):  # weight stored (in, out)
        return (jax.random.normal(k, (ci, co), jnp.float32) / jnp.sqrt(ci)).astype(jnp.float32)

    def b(k, co):
        return (0.01 * jax.random.normal(k, (1, co), jnp.float32)).astype(jnp.float32)

    return {
        "wa1": w(ks[0], adim, adim), "ba1": b(ks[1], adim),
        "wa2": w(ks[2], adim, adim), "ba2": b(ks[3], adim),
        "wa3": w(ks[4], adim, adim), "ba3": b(ks[5], adim),
        "wv1": w(ks[6], vdim, vdim),
        "wv2": w(ks[7], vdim, vdim),
        "wv3": w(ks[8], vdim, vdim),
        "war": w(ks[9], adim, rank), "bar": b(ks[10], rank),
        "wvr": w(ks[11], vdim, rank),
        "wra": w(ks[12], rank, adim), "bra": b(ks[13], adim),
        "wrv": w(ks[14], rank, vdim),
    }


if __name__ == "__main__":
    adim, vdim, rank = 32, 16, 8
    key = jax.random.PRNGKey(0)
    k_xa, k_xv, k_p, k2a, k2v = jax.random.split(key, 5)
    params = init_params(k_p, adim, vdim, rank)
    fused = prepare_params(params)     # weight fusion hoisted out of the per-call path

    run = jax.jit(flat_residual, static_argnames=("tb",))

    # Small case: B=2 -> single full block (last dims equal the array dims).
    B = 2
    x_a = jax.random.normal(k_xa, (B, adim), jnp.float32)
    x_v = jax.random.normal(k_xv, (B, vdim, 3), jnp.float32)
    out_a, out_v = run(x_a, x_v, fused, tb=2048)
    jax.block_until_ready((out_a, out_v))
    ref_a, ref_v = reference_flat_residual(x_a, x_v, params)
    assert out_a.shape == (B, adim) and out_v.shape == (B, vdim, 3)
    assert jnp.allclose(out_a, ref_a, atol=1e-5, rtol=1e-5)
    assert jnp.allclose(out_v, ref_v, atol=1e-5, rtol=1e-5)

    # Multi-step grid with a ragged tail (no wrapper-side padding): B=300, TB=128 -> grid of 3,
    # last block partial (Pallas masks the out-of-bounds writeback).
    B2 = 300
    x_a2 = jax.random.normal(k2a, (B2, adim), jnp.float32)
    x_v2 = jax.random.normal(k2v, (B2, vdim, 3), jnp.float32)
    out_a2, out_v2 = run(x_a2, x_v2, fused, tb=128)
    jax.block_until_ready((out_a2, out_v2))
    ref_a2, ref_v2 = reference_flat_residual(x_a2, x_v2, params)
    assert jnp.allclose(out_a2, ref_a2, atol=1e-5, rtol=1e-5)
    assert jnp.allclose(out_v2, ref_v2, atol=1e-5, rtol=1e-5)

    print("KERNEL_OK")
</pallas_src>

<mosaic_0001>
module attributes {stable_mosaic.version = 11 : i64} {
  func.func @_flat_residual_kernel(%arg0: i32, %arg1: memref<32x2xf32, #tpu.memory_space<vmem>>, %arg2: memref<3x16x2xf32, #tpu.memory_space<vmem>>, %arg3: memref<40x32xf32, #tpu.memory_space<vmem>>, %arg4: memref<40x1xf32, #tpu.memory_space<vmem>>, %arg5: memref<32x32xf32, #tpu.memory_space<vmem>>, %arg6: memref<32x1xf32, #tpu.memory_space<vmem>>, %arg7: memref<32x40xf32, #tpu.memory_space<vmem>>, %arg8: memref<32x1xf32, #tpu.memory_space<vmem>>, %arg9: memref<24x16xf32, #tpu.memory_space<vmem>>, %arg10: memref<16x16xf32, #tpu.memory_space<vmem>>, %arg11: memref<16x24xf32, #tpu.memory_space<vmem>>, %arg12: memref<32x2xf32, #tpu.memory_space<vmem>>, %arg13: memref<3x16x2xf32, #tpu.memory_space<vmem>>) attributes {dimension_semantics = [#tpu.dimension_semantics<parallel>], iteration_bounds = array<i64: 1>, scalar_prefetch = 0 : i64, scratch_operands = 0 : i64, tpu.core_type = #tpu.core_type<tc>, window_params = [{transform_indices = @transform_0, window_bounds = array<i64: 32, 2>}, {transform_indices = @transform_1, window_bounds = array<i64: 3, 16, 2>}, {pipeline_mode = #tpu.pipeline_mode<synchronous>, transform_indices = @transform_2, window_bounds = array<i64: 40, 32>}, {pipeline_mode = #tpu.pipeline_mode<synchronous>, transform_indices = @transform_3, window_bounds = array<i64: 40, 1>}, {pipeline_mode = #tpu.pipeline_mode<synchronous>, transform_indices = @transform_4, window_bounds = array<i64: 32, 32>}, {pipeline_mode = #tpu.pipeline_mode<synchronous>, transform_indices = @transform_5, window_bounds = array<i64: 32, 1>}, {pipeline_mode = #tpu.pipeline_mode<synchronous>, transform_indices = @transform_6, window_bounds = array<i64: 32, 40>}, {pipeline_mode = #tpu.pipeline_mode<synchronous>, transform_indices = @transform_7, window_bounds = array<i64: 32, 1>}, {pipeline_mode = #tpu.pipeline_mode<synchronous>, transform_indices = @transform_8, window_bounds = array<i64: 24, 16>}, {pipeline_mode = #tpu.pipeline_mode<synchronous>, transform_indices = @transform_9, window_bounds = array<i64: 16, 16>}, {pipeline_mode = #tpu.pipeline_mode<synchronous>, transform_indices = @transform_10, window_bounds = array<i64: 16, 24>}, {transform_indices = @transform_11, window_bounds = array<i64: 32, 2>}, {transform_indices = @transform_12, window_bounds = array<i64: 3, 16, 2>}]} {
    %c0 = arith.constant 0 : index
    %c0_0 = arith.constant 0 : index
    %0 = vector.load %arg1[%c0, %c0_0] : memref<32x2xf32, #tpu.memory_space<vmem>>, vector<32x2xf32>
    %c0_1 = arith.constant 0 : index
    %c0_2 = arith.constant 0 : index
    %c0_3 = arith.constant 0 : index
    %1 = vector.load %arg2[%c0_1, %c0_2, %c0_3] : memref<3x16x2xf32, #tpu.memory_space<vmem>>, vector<3x16x2xf32>
    %c0_4 = arith.constant 0 : index
    %c0_5 = arith.constant 0 : index
    %2 = vector.load %arg3[%c0_4, %c0_5] : memref<40x32xf32, #tpu.memory_space<vmem>>, vector<40x32xf32>
    %c0_6 = arith.constant 0 : index
    %c0_7 = arith.constant 0 : index
    %3 = vector.load %arg4[%c0_6, %c0_7] : memref<40x1xf32, #tpu.memory_space<vmem>>, vector<40x1xf32>
    %c0_8 = arith.constant 0 : index
    %c0_9 = arith.constant 0 : index
    %4 = vector.load %arg5[%c0_8, %c0_9] : memref<32x32xf32, #tpu.memory_space<vmem>>, vector<32x32xf32>
    %c0_10 = arith.constant 0 : index
    %c0_11 = arith.constant 0 : index
    %5 = vector.load %arg6[%c0_10, %c0_11] : memref<32x1xf32, #tpu.memory_space<vmem>>, vector<32x1xf32>
    %c0_12 = arith.constant 0 : index
    %c0_13 = arith.constant 0 : index
    %6 = vector.load %arg7[%c0_12, %c0_13] : memref<32x40xf32, #tpu.memory_space<vmem>>, vector<32x40xf32>
    %c0_14 = arith.constant 0 : index
    %c0_15 = arith.constant 0 : index
    %7 = vector.load %arg8[%c0_14, %c0_15] : memref<32x1xf32, #tpu.memory_space<vmem>>, vector<32x1xf32>
    %c0_16 = arith.constant 0 : index
    %c0_17 = arith.constant 0 : index
    %8 = vector.load %arg9[%c0_16, %c0_17] : memref<24x16xf32, #tpu.memory_space<vmem>>, vector<24x16xf32>
    %c0_18 = arith.constant 0 : index
    %c0_19 = arith.constant 0 : index
    %9 = vector.load %arg10[%c0_18, %c0_19] : memref<16x16xf32, #tpu.memory_space<vmem>>, vector<16x16xf32>
    %c0_20 = arith.constant 0 : index
    %c0_21 = arith.constant 0 : index
    %10 = vector.load %arg11[%c0_20, %c0_21] : memref<16x24xf32, #tpu.memory_space<vmem>>, vector<16x24xf32>
    %cst = arith.constant dense<0.000000e+00> : vector<40x2xf32>
    %11 = tpu.matmul %2, %0, %cst {dimension_numbers = #tpu.dot_dimension_numbers<[1], [0], [0], [1], [0, 0, 1, 1], [], []>} : vector<40x32xf32>, vector<32x2xf32>, vector<40x2xf32> -> vector<40x2xf32>
    %12 = vector.broadcast %3 : vector<40x1xf32> to vector<40x2xf32>
    %13 = arith.addf %11, %12 : vector<40x2xf32>
    %14 = vector.extract_strided_slice %13 {offsets = [0, 0], sizes = [32, 2], strides = [1, 1]} : vector<40x2xf32> to vector<32x2xf32>
    %cst_22 = arith.constant 0.000000e+00 : f32
    %15 = vector.broadcast %cst_22 : f32 to vector<32x2xf32>
    %16 = arith.cmpf oge, %14, %15 : vector<32x2xf32>
    %cst_23 = arith.constant 2.000000e-01 : f32
    %17 = vector.broadcast %cst_23 : f32 to vector<32x2xf32>
    %18 = arith.mulf %17, %14 : vector<32x2xf32>
    %19 = arith.select %16, %14, %18 : vector<32x2xi1>, vector<32x2xf32>
    %20 = vector.extract_strided_slice %13 {offsets = [32, 0], sizes = [8, 2], strides = [1, 1]} : vector<40x2xf32> to vector<8x2xf32>
    %21 = vector.extract_strided_slice %1 {offsets = [0, 0, 0], sizes = [1, 16, 2], strides = [1, 1, 1]} : vector<3x16x2xf32> to vector<1x16x2xf32>
    %22 = vector.shape_cast %21 : vector<1x16x2xf32> to vector<16x2xf32>
    %cst_24 = arith.constant dense<0.000000e+00> : vector<24x2xf32>
    %23 = tpu.matmul %8, %22, %cst_24 {dimension_numbers = #tpu.dot_dimension_numbers<[1], [0], [0], [1], [0, 0, 1, 1], [], []>} : vector<24x16xf32>, vector<16x2xf32>, vector<24x2xf32> -> vector<24x2xf32>
    %24 = vector.extract_strided_slice %1 {offsets = [1, 0, 0], sizes = [1, 16, 2], strides = [1, 1, 1]} : vector<3x16x2xf32> to vector<1x16x2xf32>
    %25 = vector.shape_cast %24 : vector<1x16x2xf32> to vector<16x2xf32>
    %cst_25 = arith.constant dense<0.000000e+00> : vector<24x2xf32>
    %26 = tpu.matmul %8, %25, %cst_25 {dimension_numbers = #tpu.dot_dimension_numbers<[1], [0], [0], [1], [0, 0, 1, 1], [], []>} : vector<24x16xf32>, vector<16x2xf32>, vector<24x2xf32> -> vector<24x2xf32>
    %27 = vector.extract_strided_slice %1 {offsets = [2, 0, 0], sizes = [1, 16, 2], strides = [1, 1, 1]} : vector<3x16x2xf32> to vector<1x16x2xf32>
    %28 = vector.shape_cast %27 : vector<1x16x2xf32> to vector<16x2xf32>
    %cst_26 = arith.constant dense<0.000000e+00> : vector<24x2xf32>
    %29 = tpu.matmul %8, %28, %cst_26 {dimension_numbers = #tpu.dot_dimension_numbers<[1], [0], [0], [1], [0, 0, 1, 1], [], []>} : vector<24x16xf32>, vector<16x2xf32>, vector<24x2xf32> -> vector<24x2xf32>
    %30 = vector.shape_cast %23 : vector<24x2xf32> to vector<1x24x2xf32>
    %31 = vector.shape_cast %26 : vector<24x2xf32> to vector<1x24x2xf32>
    %32 = vector.shape_cast %29 : vector<24x2xf32> to vector<1x24x2xf32>
    %33 = tpu.concatenate %30, %31, %32 in 0 : vector<1x24x2xf32>, vector<1x24x2xf32>, vector<1x24x2xf32> -> vector<3x24x2xf32>
    %34 = vector.extract_strided_slice %33 {offsets = [0, 0, 0], sizes = [3, 16, 2], strides = [1, 1, 1]} : vector<3x24x2xf32> to vector<3x16x2xf32>
    %35 = arith.mulf %34, %34 : vector<3x16x2xf32>
    %cst_27 = arith.constant dense<0.000000e+00> : vector<16x2xf32>
    %36 = vector.multi_reduction <add>, %35, %cst_27 [0] : vector<3x16x2xf32> to vector<16x2xf32>
    %37 = vector.shape_cast %36 : vector<16x2xf32> to vector<1x16x2xf32>
    %cst_28 = arith.constant 1.000000e+00 : f32
    %38 = vector.broadcast %cst_28 : f32 to vector<1x16x2xf32>
    %39 = arith.addf %38, %37 : vector<1x16x2xf32>
    %40 = math.sqrt %39 : vector<1x16x2xf32>
    %41 = math.rsqrt %40 : vector<1x16x2xf32>
    %42 = vector.broadcast %41 : vector<1x16x2xf32> to vector<3x16x2xf32>
    %43 = arith.mulf %34, %42 : vector<3x16x2xf32>
    %44 = vector.extract_strided_slice %33 {offsets = [0, 16, 0], sizes = [3, 8, 2], strides = [1, 1, 1]} : vector<3x24x2xf32> to vector<3x8x2xf32>
    %cst_29 = arith.constant dense<0.000000e+00> : vector<32x2xf32>
    %45 = tpu.matmul %4, %19, %cst_29 {dimension_numbers = #tpu.dot_dimension_numbers<[1], [0], [0], [1], [0, 0, 1, 1], [], []>} : vector<32x32xf32>, vector<32x2xf32>, vector<32x2xf32> -> vector<32x2xf32>
    %46 = vector.broadcast %5 : vector<32x1xf32> to vector<32x2xf32>
    %47 = arith.addf %45, %46 : vector<32x2xf32>
    %cst_30 = arith.constant 0.000000e+00 : f32
    %48 = vector.broadcast %cst_30 : f32 to vector<32x2xf32>
    %49 = arith.cmpf oge, %47, %48 : vector<32x2xf32>
    %cst_31 = arith.constant 2.000000e-01 : f32
    %50 = vector.broadcast %cst_31 : f32 to vector<32x2xf32>
    %51 = arith.mulf %50, %47 : vector<32x2xf32>
    %52 = arith.select %49, %47, %51 : vector<32x2xi1>, vector<32x2xf32>
    %53 = vector.extract_strided_slice %43 {offsets = [0, 0, 0], sizes = [1, 16, 2], strides = [1, 1, 1]} : vector<3x16x2xf32> to vector<1x16x2xf32>
    %54 = vector.shape_cast %53 : vector<1x16x2xf32> to vector<16x2xf32>
    %cst_32 = arith.constant dense<0.000000e+00> : vector<16x2xf32>
    %55 = tpu.matmul %9, %54, %cst_32 {dimension_numbers = #tpu.dot_dimension_numbers<[1], [0], [0], [1], [0, 0, 1, 1], [], []>} : vector<16x16xf32>, vector<16x2xf32>, vector<16x2xf32> -> vector<16x2xf32>
    %56 = vector.extract_strided_slice %43 {offsets = [1, 0, 0], sizes = [1, 16, 2], strides = [1, 1, 1]} : vector<3x16x2xf32> to vector<1x16x2xf32>
    %57 = vector.shape_cast %56 : vector<1x16x2xf32> to vector<16x2xf32>
    %cst_33 = arith.constant dense<0.000000e+00> : vector<16x2xf32>
    %58 = tpu.matmul %9, %57, %cst_33 {dimension_numbers = #tpu.dot_dimension_numbers<[1], [0], [0], [1], [0, 0, 1, 1], [], []>} : vector<16x16xf32>, vector<16x2xf32>, vector<16x2xf32> -> vector<16x2xf32>
    %59 = vector.extract_strided_slice %43 {offsets = [2, 0, 0], sizes = [1, 16, 2], strides = [1, 1, 1]} : vector<3x16x2xf32> to vector<1x16x2xf32>
    %60 = vector.shape_cast %59 : vector<1x16x2xf32> to vector<16x2xf32>
    %cst_34 = arith.constant dense<0.000000e+00> : vector<16x2xf32>
    %61 = tpu.matmul %9, %60, %cst_34 {dimension_numbers = #tpu.dot_dimension_numbers<[1], [0], [0], [1], [0, 0, 1, 1], [], []>} : vector<16x16xf32>, vector<16x2xf32>, vector<16x2xf32> -> vector<16x2xf32>
    %62 = vector.shape_cast %55 : vector<16x2xf32> to vector<1x16x2xf32>
    %63 = vector.shape_cast %58 : vector<16x2xf32> to vector<1x16x2xf32>
    %64 = vector.shape_cast %61 : vector<16x2xf32> to vector<1x16x2xf32>
    %65 = tpu.concatenate %62, %63, %64 in 0 : vector<1x16x2xf32>, vector<1x16x2xf32>, vector<1x16x2xf32> -> vector<3x16x2xf32>
    %66 = arith.mulf %65, %65 : vector<3x16x2xf32>
    %cst_35 = arith.constant dense<0.000000e+00> : vector<16x2xf32>
    %67 = vector.multi_reduction <add>, %66, %cst_35 [0] : vector<3x16x2xf32> to vector<16x2xf32>
    %68 = vector.shape_cast %67 : vector<16x2xf32> to vector<1x16x2xf32>
    %cst_36 = arith.constant 1.000000e+00 : f32
    %69 = vector.broadcast %cst_36 : f32 to vector<1x16x2xf32>
    %70 = arith.addf %69, %68 : vector<1x16x2xf32>
    %71 = math.sqrt %70 : vector<1x16x2xf32>
    %72 = math.rsqrt %71 : vector<1x16x2xf32>
    %73 = vector.broadcast %72 : vector<1x16x2xf32> to vector<3x16x2xf32>
    %74 = arith.mulf %65, %73 : vector<3x16x2xf32>
    %75 = arith.mulf %44, %44 : vector<3x8x2xf32>
    %cst_37 = arith.constant dense<0.000000e+00> : vector<8x2xf32>
    %76 = vector.multi_reduction <add>, %75, %cst_37 [0] : vector<3x8x2xf32> to vector<8x2xf32>
    %77 = vector.shape_cast %20 : vector<8x2xf32> to vector<1x8x2xf32>
    %78 = vector.broadcast %77 : vector<1x8x2xf32> to vector<3x8x2xf32>
    %79 = arith.mulf %78, %44 : vector<3x8x2xf32>
    %80 = tpu.concatenate %52, %76 in 0 : vector<32x2xf32>, vector<8x2xf32> -> vector<40x2xf32>
    %cst_38 = arith.constant dense<0.000000e+00> : vector<32x2xf32>
    %81 = tpu.matmul %6, %80, %cst_38 {dimension_numbers = #tpu.dot_dimension_numbers<[1], [0], [0], [1], [0, 0, 1, 1], [], []>} : vector<32x40xf32>, vector<40x2xf32>, vector<32x2xf32> -> vector<32x2xf32>
    %82 = vector.broadcast %7 : vector<32x1xf32> to vector<32x2xf32>
    %83 = arith.addf %81, %82 : vector<32x2xf32>
    %84 = tpu.concatenate %74, %79 in 1 : vector<3x16x2xf32>, vector<3x8x2xf32> -> vector<3x24x2xf32>
    %85 = vector.extract_strided_slice %84 {offsets = [0, 0, 0], sizes = [1, 24, 2], strides = [1, 1, 1]} : vector<3x24x2xf32> to vector<1x24x2xf32>
    %86 = vector.shape_cast %85 : vector<1x24x2xf32> to vector<24x2xf32>
    %cst_39 = arith.constant dense<0.000000e+00> : vector<16x2xf32>
    %87 = tpu.matmul %10, %86, %cst_39 {dimension_numbers = #tpu.dot_dimension_numbers<[1], [0], [0], [1], [0, 0, 1, 1], [], []>} : vector<16x24xf32>, vector<24x2xf32>, vector<16x2xf32> -> vector<16x2xf32>
    %88 = vector.extract_strided_slice %84 {offsets = [1, 0, 0], sizes = [1, 24, 2], strides = [1, 1, 1]} : vector<3x24x2xf32> to vector<1x24x2xf32>
    %89 = vector.shape_cast %88 : vector<1x24x2xf32> to vector<24x2xf32>
    %cst_40 = arith.constant dense<0.000000e+00> : vector<16x2xf32>
    %90 = tpu.matmul %10, %89, %cst_40 {dimension_numbers = #tpu.dot_dimension_numbers<[1], [0], [0], [1], [0, 0, 1, 1], [], []>} : vector<16x24xf32>, vector<24x2xf32>, vector<16x2xf32> -> vector<16x2xf32>
    %91 = vector.extract_strided_slice %84 {offsets = [2, 0, 0], sizes = [1, 24, 2], strides = [1, 1, 1]} : vector<3x24x2xf32> to vector<1x24x2xf32>
    %92 = vector.shape_cast %91 : vector<1x24x2xf32> to vector<24x2xf32>
    %cst_41 = arith.constant dense<0.000000e+00> : vector<16x2xf32>
    %93 = tpu.matmul %10, %92, %cst_41 {dimension_numbers = #tpu.dot_dimension_numbers<[1], [0], [0], [1], [0, 0, 1, 1], [], []>} : vector<16x24xf32>, vector<24x2xf32>, vector<16x2xf32> -> vector<16x2xf32>
    %94 = vector.shape_cast %87 : vector<16x2xf32> to vector<1x16x2xf32>
    %95 = vector.shape_cast %90 : vector<16x2xf32> to vector<1x16x2xf32>
    %96 = vector.shape_cast %93 : vector<16x2xf32> to vector<1x16x2xf32>
    %97 = tpu.concatenate %94, %95, %96 in 0 : vector<1x16x2xf32>, vector<1x16x2xf32>, vector<1x16x2xf32> -> vector<3x16x2xf32>
    %cst_42 = arith.constant 5.000000e-01 : f32
    %98 = vector.broadcast %cst_42 : f32 to vector<32x2xf32>
    %99 = arith.mulf %98, %83 : vector<32x2xf32>
    %100 = arith.addf %0, %99 : vector<32x2xf32>
    %c0_43 = arith.constant 0 : index
    %c0_44 = arith.constant 0 : index
    %101 = vector.load %arg12[%c0_43, %c0_44] : memref<32x2xf32, #tpu.memory_space<vmem>>, vector<32x2xf32>
    tpu.vector_store %arg12[%c0_43, %c0_44], %100 {strides = array<i32>} : memref<32x2xf32, #tpu.memory_space<vmem>>, vector<32x2xf32>,
    %cst_45 = arith.constant 5.000000e-02 : f32
    %102 = vector.broadcast %cst_45 : f32 to vector<3x16x2xf32>
    %103 = arith.mulf %102, %97 : vector<3x16x2xf32>
    %104 = arith.addf %1, %103 : vector<3x16x2xf32>
    %c0_46 = arith.constant 0 : index
    %c0_47 = arith.constant 0 : index
    %c0_48 = arith.constant 0 : index
    %105 = vector.load %arg13[%c0_46, %c0_47, %c0_48] : memref<3x16x2xf32, #tpu.memory_space<vmem>>, vector<3x16x2xf32>
    tpu.vector_store %arg13[%c0_46, %c0_47, %c0_48], %104 {strides = array<i32>} : memref<3x16x2xf32, #tpu.memory_space<vmem>>, vector<3x16x2xf32>,
    return
  }
  func.func @transform_0(%arg0: i32) -> (i32, i32) {
    %c0_i32 = arith.constant 0 : i32
    %c0_i32_0 = arith.constant 0 : i32
    return %c0_i32, %arg0 : i32, i32
  }
  func.func @transform_1(%arg0: i32) -> (i32, i32, i32) {
    %c0_i32 = arith.constant 0 : i32
    %c0_i32_0 = arith.constant 0 : i32
    %c0_i32_1 = arith.constant 0 : i32
    return %c0_i32, %c0_i32_0, %arg0 : i32, i32, i32
  }
  func.func @transform_2(%arg0: i32) -> (i32, i32) {
    %c0_i32 = arith.constant 0 : i32
    %c0_i32_0 = arith.constant 0 : i32
    %c0_i32_1 = arith.constant 0 : i32
    return %c0_i32, %c0_i32_0 : i32, i32
  }
  func.func @transform_3(%arg0: i32) -> (i32, i32) {
    %c0_i32 = arith.constant 0 : i32
    %c0_i32_0 = arith.constant 0 : i32
    %c0_i32_1 = arith.constant 0 : i32
    return %c0_i32, %c0_i32_0 : i32, i32
  }
  func.func @transform_4(%arg0: i32) -> (i32, i32) {
    %c0_i32 = arith.constant 0 : i32
    %c0_i32_0 = arith.constant 0 : i32
    %c0_i32_1 = arith.constant 0 : i32
    return %c0_i32, %c0_i32_0 : i32, i32
  }
  func.func @transform_5(%arg0: i32) -> (i32, i32) {
    %c0_i32 = arith.constant 0 : i32
    %c0_i32_0 = arith.constant 0 : i32
    %c0_i32_1 = arith.constant 0 : i32
    return %c0_i32, %c0_i32_0 : i32, i32
  }
  func.func @transform_6(%arg0: i32) -> (i32, i32) {
    %c0_i32 = arith.constant 0 : i32
    %c0_i32_0 = arith.constant 0 : i32
    %c0_i32_1 = arith.constant 0 : i32
    return %c0_i32, %c0_i32_0 : i32, i32
  }
  func.func @transform_7(%arg0: i32) -> (i32, i32) {
    %c0_i32 = arith.constant 0 : i32
    %c0_i32_0 = arith.constant 0 : i32
    %c0_i32_1 = arith.constant 0 : i32
    return %c0_i32, %c0_i32_0 : i32, i32
  }
  func.func @transform_8(%arg0: i32) -> (i32, i32) {
    %c0_i32 = arith.constant 0 : i32
    %c0_i32_0 = arith.constant 0 : i32
    %c0_i32_1 = arith.constant 0 : i32
    return %c0_i32, %c0_i32_0 : i32, i32
  }
  func.func @transform_9(%arg0: i32) -> (i32, i32) {
    %c0_i32 = arith.constant 0 : i32
    %c0_i32_0 = arith.constant 0 : i32
    %c0_i32_1 = arith.constant 0 : i32
    return %c0_i32, %c0_i32_0 : i32, i32
  }
  func.func @transform_10(%arg0: i32) -> (i32, i32) {
    %c0_i32 = arith.constant 0 : i32
    %c0_i32_0 = arith.constant 0 : i32
    %c0_i32_1 = arith.constant 0 : i32
    return %c0_i32, %c0_i32_0 : i32, i32
  }
  func.func @transform_11(%arg0: i32) -> (i32, i32) {
    %c0_i32 = arith.constant 0 : i32
    %c0_i32_0 = arith.constant 0 : i32
    return %c0_i32, %arg0 : i32, i32
  }
  func.func @transform_12(%arg0: i32) -> (i32, i32, i32) {
    %c0_i32 = arith.constant 0 : i32
    %c0_i32_0 = arith.constant 0 : i32
    %c0_i32_1 = arith.constant 0 : i32
    return %c0_i32, %c0_i32_0, %arg0 : i32, i32, i32
  }
}

</mosaic_0001>

<bundles_post_ra>
// kernel: flat_residual.1
= control target key start
LH: loop header
LB: loop body
LE: loop exit
PB: predicated region body
PF: predicated region fallthrough
CT: control target
= control target key end

     0   :  { %v1583_v0 = vmov 0.0   ;;  %vm1584_vm0 = vmmov 0   ;;  %vm226_vm1 = vcmask 130048   ;;  %vm108_vm2 = vcmask 261120   ;;  %s2012_s0 = inlined_call_operand.vmem [shape: f32[32,2], index: 0, kind: input, shape index: {}]   ;;  %s2013_s1 = inlined_call_operand.vmem [shape: f32[3,16,2], index: 1, kind: input, shape index: {}]   ;;  %s2014_s8 = inlined_call_operand.vmem [shape: f32[24,16], index: 8, kind: input, shape index: {}]   ;;  %s2015_s2 = inlined_call_operand.vmem [shape: f32[40,32], index: 2, kind: input, shape index: {}]   ;;  %s2016_s3 = inlined_call_operand.vmem [shape: f32[40,1], index: 3, kind: input, shape index: {}]   ;;  %s2017_s5 = inlined_call_operand.vmem [shape: f32[32,1], index: 5, kind: input, shape index: {}]   ;;  %s2018_s7 = inlined_call_operand.vmem [shape: f32[32,1], index: 7, kind: input, shape index: {}]   ;;  %s2019_s4 = inlined_call_operand.vmem [shape: f32[32,32], index: 4, kind: input, shape index: {}]   ;;  %s2020_s9 = inlined_call_operand.vmem [shape: f32[16,16], index: 9, kind: input, shape index: {}]   ;;  %s2021_s6 = inlined_call_operand.vmem [shape: f32[32,40], index: 6, kind: input, shape index: {}]   ;;  %s2022_s10 = inlined_call_operand.vmem [shape: f32[16,24], index: 10, kind: input, shape index: {}]   ;;  %s2023_s11 = inlined_call_operand.vmem [shape: f32[32,2], index: 11, kind: output, shape index: {0}]   ;;  %s2024_s12 = inlined_call_operand.vmem [shape: f32[3,16,2], index: 12, kind: output, shape index: {1}]  }
   0x1   :  { %1418 = vmatprep.subr.mxu0 %v1583_v0  ;;  %v1655_v1 = vld [vmem:[%s2012_s0 + $0x18] sm:$0xff]  ;;  %v1660_v2 = vld [vmem:[%s2012_s0 + $0x10] sm:$0xff]  ;;  %1558 = vmatprep.subr.mxu1 %v1583_v0  ;;  %v1669_v3 = vld [vmem:[%s2013_s1 + $0x8] sm:$0xff]  ;;  %v1585_v17 = vmov 0   ;;  %vm482_vm7 = vcmask 15360   ;;  %vm948_vm12 = vcmask 326656  }
   0x2   :  { %1419 = vmatpush3.msra.mxu0 %v1655_v1  ;;  %1426 = vmatprep.mubr.msk.f32.mxu0 %vm1584_vm0, %v1583_v0  ;;  %v1675_v4 = vld [vmem:[%s2012_s0 + $0x8] sm:$0xff]  ;;  %v1681_v5 = vld [vmem:[%s2013_s1] sm:$0xff]  ;;  %v1712_v9 = vld [vmem:[%s2014_s8 + $0x10] sm:$0xff]  ;;  %vm1046_vm13 = vcmask 195584  }
   0x3   :  { %1420 = vmatprep.subr.mxu0 %v1583_v0  ;;  %1560 = vmatpush3.msra.mxu1 %v1669_v3  ;;  %v1688_v6 = vld [vmem:[%s2014_s8 + $0x8] sm:$0xff]  ;;  %v1694_v7 = vld [vmem:[%s2012_s0] sm:$0xff]  ;;  %v1719_v10 = vld [vmem:[%s2013_s1 + $0x18] sm:$0xff] }
   0x4   :  { %1421 = vmatpush3.msra.mxu0 %v1660_v2  ;;  %1559 = vmatprep.subr.mxu1 %v1583_v0  ;;  %v50_v8 = vld [vmem:[%s2015_s2] sm:$0xff]  ;;  %v51_v11 = vld [vmem:[%s2015_s2 + $0x8] sm:$0xff]  ;;  %v1733_v12 = vld [vmem:[%s2013_s1 + $0x10] sm:$0xff] }
   0x5   :  { %1422 = vmatprep.subr.mxu0 %v1583_v0  ;;  %1561 = vmatpush3.msra.mxu1 %v1681_v5  ;;  %v76_v13 = vld [vmem:[%s2014_s8] sm:$0xff]  ;;  %v52_v14 = vld [vmem:[%s2015_s2 + $0x10] sm:$0xff]  ;;  %v56_v15 = vld [vmem:[%s2016_s3 + $0x8] sm:$0xff] }
   0x6   :  { %1423 = vmatpush3.msra.mxu0 %v1675_v4  ;;  %1448 = vmatprep.mubr.msk.f32.mxu1 %vm1584_vm0, %v1583_v0  ;;  %v53_v16 = vld [vmem:[%s2015_s2 + $0x18] sm:$0xff]  ;;  %v55_v19 = vld [vmem:[%s2016_s3] sm:$0xff]  ;;  %v57_v21 = vld [vmem:[%s2016_s3 + $0x10] sm:$0xff] }
   0x7   :  { %1424 = vmatprep.subr.mxu0 %v1583_v0  ;;  %1449 = vmatmul.mubr.msk.f32.vlgmr.msra.gmra.mxu1 %vm226_vm1, %v1688_v6  ;;  %v58_v18 = vld [vmem:[%s2016_s3 + $0x18] sm:$0xff]  ;;  %v54_v20 = vld [vmem:[%s2015_s2 + $0x20] sm:$0xff]  ;;  %v66_v22 = vld [vmem:[%s2017_s5 + $0x10] sm:$0xff] }
   0x8   :  { %1425 = vmatpush3.msra.mxu0 %v1694_v7  ;;  %1451 = vmatprep.mubr.msk.f32.mxu1 %vm1584_vm0, %v1583_v0  ;;  %v67_v23 = vld [vmem:[%s2017_s5 + $0x18] sm:$0xff]  ;;  %v1797_v24 = vld [vmem:[%s2013_s1 + $0x28] sm:$0xff]  ;;  %v59_v25 = vld [vmem:[%s2016_s3 + $0x20] sm:$0xff] }
   0x9   :  { %1427 = vmatmul.mubr.msk.f32.vlgmr.msra.gmra.mxu0 %vm108_vm2, %v50_v8  ;;  %1441 = vmatprep.subr.mxu0 %v1583_v0  ;;  %v1806_v26 = vld [vmem:[%s2013_s1 + $0x20] sm:$0xff]  ;;  %v65_v27 = vld [vmem:[%s2017_s5 + $0x8] sm:$0xff]  ;;  %v74_v30 = vld [vmem:[%s2018_s7 + $0x10] sm:$0xff] }
   0xa   :  { %1429 = vmatprep.mubr.msk.f32.mxu0 %vm1584_vm0, %v1583_v0  ;;  %1442 = vmatpush3.msra.mxu0 %v1669_v3  ;;  %v72_v28 = vld [vmem:[%s2018_s7] sm:$0xff]  ;;  %v73_v31 = vld [vmem:[%s2018_s7 + $0x8] sm:$0xff]  ;;  %v75_v32 = vld [vmem:[%s2018_s7 + $0x18] sm:$0xff] }
   0xb   :  { %1452 = vmatmul.mubr.msk.f32.gmra.mxu1 %vm226_vm1, %v1712_v9  ;;  %1454 = vmatprep.subr.mxu1 %v1583_v0  ;;  %v64_v29 = vld [vmem:[%s2017_s5] sm:$0xff] }
   0xc   :  { %1455 = vmatpush3.msra.mxu1 %v1719_v10  ;;  %1458 = vmatprep.mubr.msk.f32.mxu1 %vm1584_vm0, %v1583_v0  ;;  %v60_v33 = vld [vmem:[%s2019_s4] sm:$0xff] }
   0xd   :  { %1430 = vmatmul.mubr.msk.f32.gmra.mxu0 %vm108_vm2, %v51_v11  ;;  %1456 = vmatprep.subr.mxu1 %v1583_v0 }
   0xe   :  { %1432 = vmatprep.mubr.msk.f32.mxu0 %vm1584_vm0, %v1583_v0  ;;  %1457 = vmatpush3.msra.mxu1 %v1733_v12 }
   0xf   :  { %1459 = vmatmul.mubr.msk.f32.vlgmr.msra.gmra.mxu1 %vm226_vm1, %v76_v13  ;;  %1443 = vmatprep.subr.mxu0 %v1583_v0 }
  0x10   :  { %1461 = vmatprep.mubr.msk.f32.mxu1 %vm1584_vm0, %v1583_v0  ;;  %1444 = vmatpush3.msra.mxu0 %v1681_v5 }
  0x11   :  { %1433 = vmatmul.mubr.msk.f32.gmra.mxu0 %vm108_vm2, %v52_v14  ;;  %1467 = vmatprep.subr.mxu0 %v1583_v0 }
  0x12   :  { %1435 = vmatprep.mubr.msk.f32.mxu0 %vm1584_vm0, %v1583_v0  ;;  %1566 = vset.pattern.permute.xlu1 %v1585_v17 }
  0x13   :  { %1462 = vmatmul.mubr.msk.f32.gmra.mxu1 %vm226_vm1, %v1688_v6  ;;  %90 = vperm.xlu1 %1566, %v56_v15  }
  0x14   :  { %1464 = vmatprep.mubr.msk.f32.mxu1 %vm1584_vm0, %v1583_v0  ;;  %1565 = vset.pattern.permute.xlu0 %v1585_v17 }
  0x15   :  { %1436 = vmatmul.mubr.msk.f32.gmra.mxu0 %vm108_vm2, %v53_v16  ;;  %100 = vperm.xlu0 %1565, %v58_v18  }
  0x16   :  { %1438 = vmatprep.mubr.msk.f32.mxu0 %vm1584_vm0, %v1583_v0 }
  0x17   :  { %1465 = vmatmul.mubr.msk.f32.gmra.mxu1 %vm226_vm1, %v1712_v9  ;;  %85 = vperm.xlu1 %1566, %v55_v19  }
  0x18   :  { %1488 = vmatprep.mubr.msk.f32.mxu1 %vm108_vm2, %v60_v33 }
  0x19   :  { %1439 = vmatmul.mubr.msk.f32.gmra.mxu0 %vm108_vm2, %v54_v20  ;;  %95 = vperm.xlu0 %1565, %v57_v21  }
  0x1a   :  { %1445 = vmatprep.mubr.msk.f32.mxu0 %vm1584_vm0, %v1583_v0 }
  0x1b   :  { %529 = vperm.xlu1 %1566, %v66_v22  }
  0x1d   :  { %1446 = vmatmul.mubr.msk.f32.vlgmr.msra.gmra.mxu0 %vm226_vm1, %v76_v13  ;;  %534 = vperm.xlu0 %1565, %v67_v23  }
  0x1e   :  { %1468 = vmatpush3.msra.mxu0 %v1797_v24  ;;  %1471 = vmatprep.mubr.msk.f32.mxu0 %vm1584_vm0, %v1583_v0 }
  0x1f   :  { %1469 = vmatprep.subr.mxu0 %v1583_v0  ;;  %105 = vperm.xlu1 %1566, %v59_v25   ;;  %v61_v25 = vld [vmem:[%s2019_s4 + $0x8] sm:$0xff] }
  0x20   :  { %1470 = vmatpush3.msra.mxu0 %v1806_v26 }
  0x21   :  { %1472 = vmatmul.mubr.msk.f32.vlgmr.msra.gmra.mxu0 %vm226_vm1, %v76_v13  ;;  %524 = vperm.xlu0 %1565, %v65_v27  }
  0x22   :  { %1474 = vmatprep.mubr.msk.f32.mxu0 %vm1584_vm0, %v1583_v0 }
  0x23   :  { %930 = vperm.xlu1 %1566, %v72_v28  }
  0x25   :  { %1475 = vmatmul.mubr.msk.f32.gmra.mxu0 %vm226_vm1, %v1688_v6  ;;  %519 = vperm.xlu0 %1565, %v64_v29  }
  0x26   :  { %1477 = vmatprep.mubr.msk.f32.mxu0 %vm1584_vm0, %v1583_v0 }
  0x27   :  { %940 = vperm.xlu1 %1566, %v74_v30   ;;  %v62_v30 = vld [vmem:[%s2019_s4 + $0x10] sm:$0xff] }
  0x29   :  { %1478 = vmatmul.mubr.msk.f32.gmra.mxu0 %vm226_vm1, %v1712_v9  ;;  %935 = vperm.xlu0 %1565, %v73_v31  }
  0x2d   :  { %945 = vperm.xlu0 %1565, %v75_v32  }
  0x8e   :  { %v91_v34 = vpop.permute.xlu1 %90 }
  0x90   :  { %v101_v38 = vpop.permute.xlu0 %100 }
  0x92   :  { %v86_v41 = vpop.permute.xlu1 %85 }
  0x94   :  { %v96_v46 = vpop.permute.xlu0 %95 }
  0x96   :  { %v1850_v47 = vpop.permute.xlu1 %529 }
  0x9a   :  { %v106_v57 = vpop.permute.xlu1 %105 }
  0xc7   :  { %v1844_v35 = vpop.f32.mrf.mxu1 }
  0xc8   :  { %v477_v27 = vmul.f32 %v1844_v35, %v1844_v35 }
  0xc9   :  { %v190_v36 = vpop.f32.mrf.mxu0  ;;  %v1450_v37 = vpop.f32.mrf.mxu1 }
  0xca   :  { %v191_v60 = vadd.f32 %v190_v36, %v86_v41 }
  0xcb   :  { %v1428_v39 = vpop.f32.mrf.mxu0  ;;  %v1846_v40 = vpop.f32.mrf.mxu1 }
  0xcc   :  { %v218_v13 = vmul.f32 0.2, %v191_v60  ;;  %vm214_vm6 = vcmp.ge.f32.partialorder %v191_v60, 0.0  ;;  %v488_v39 = vsel %vm482_vm7, %v477_v27, 0.0  ;;  %v80_v27 = vld [vmem:[%s2020_s9 + $0x8] sm:$0xff] }
  0xcd   :  { %v195_v42 = vpop.f32.mrf.mxu0  ;;  %v1453_v43 = vpop.f32.mrf.mxu1 }
  0xce   :  { %v196_v55 = vadd.f32 %v195_v42, %v91_v34  ;;  %v222_v23 = vsel %vm214_vm6, %v191_v60, %v218_v13  ;;  %v917_v34 = vmul.f32 %v1846_v40, %v1846_v40 }
  0xcf   :  { %v1431_v44 = vpop.f32.mrf.mxu0  ;;  %v1848_v45 = vpop.f32.mrf.mxu1 }
  0xd0   :  { %v219_v6 = vmul.f32 0.2, %v196_v55  ;;  %vm215_vm5 = vcmp.ge.f32.partialorder %v196_v55, 0.0  ;;  %v478_v14 = vmul.f32 %v1848_v45, %v1848_v45  ;;  %v79_v44 = vld [vmem:[%s2020_s9] sm:$0xff] }
  0xd1   :  { %v200_v48 = vpop.f32.mrf.mxu0  ;;  %v1460_v49 = vpop.f32.mrf.mxu1 }
  0xd2   :  { %v201_v52 = vadd.f32 %v200_v48, %v96_v46  ;;  %v223_v19 = vsel %vm215_vm5, %v196_v55, %v219_v6  ;;  %v484_v21 = vsel %vm482_vm7, %v478_v14, 0.0 }
  0xd3   :  { %v1434_v50 = vpop.f32.mrf.mxu0  ;;  %v1852_v51 = vpop.f32.mrf.mxu1 }
  0xd4   :  { %v220_v61 = vmul.f32 0.2, %v201_v52  ;;  %vm216_vm4 = vcmp.ge.f32.partialorder %v201_v52, 0.0  ;;  %v479_v28 = vmul.f32 %v1852_v51, %v1852_v51  ;;  %v920_v50 = vsel %vm482_vm7, %v917_v34, 0.0 }
  0xd5   :  { %v205_v53 = vpop.f32.mrf.mxu0  ;;  %v1463_v54 = vpop.f32.mrf.mxu1 }
  0xd6   :  { %v206_v56 = vadd.f32 %v205_v53, %v101_v38  ;;  %v224_v16 = vsel %vm216_vm4, %v201_v52, %v220_v61  ;;  %v63_v38 = vld [vmem:[%s2019_s4 + $0x18] sm:$0xff]  ;;  %v489_v41 = vsel %vm482_vm7, %v479_v28, 0.0 }
  0xd7   :  { %v1437_v58 = vpop.f32.mrf.mxu0  ;;  %v392_v59 = vpop.f32.mrf.mxu1  ;;  %v490_v52 = vadd.f32 %v489_v41, %v488_v39 }
  0xd8   :  { %v221_v62 = vmul.f32 0.2, %v206_v56  ;;  %vm217_vm3 = vcmp.ge.f32.partialorder %v206_v56, 0.0  ;;  %v918_v36 = vmul.f32 %v392_v59, %v392_v59 }
  0xd9   :  { %v210_v63 = vpop.f32.mrf.mxu0  ;;  %v1466_v0 = vpop.f32.mrf.mxu1 }
  0xda   :  { %v1854_v8 = vadd.f32 %v210_v63, %v106_v57  ;;  %v225_v9 = vsel %vm217_vm3, %v206_v56, %v221_v62  ;;  %v921_v53 = vsel %vm482_vm7, %v918_v36, 0.0 }
  0xdb   :  { %v1440_v11 = vpop.f32.mrf.mxu0  ;;  %1480 = vmatprep.subr.mxu1 %v225_v9 }
  0xdc   :  { %v1859_v15 = vmul.f32 %v392_v59, %v1854_v8  ;;  %1481 = vmatpush3.msra.mxu1 %v225_v9  ;;  %v922_v59 = vadd.f32 %v921_v53, %v920_v50  ;;  %v70_v53 = vld [vmem:[%s2021_s6 + $0x10] sm:$0xff] }
  0xdd   :  { %v1861_v17 = vpop.f32.mrf.mxu0  ;;  %1482 = vmatprep.subr.mxu1 %v224_v16 }
  0xde   :  { %v476_v18 = vmul.f32 %v1861_v17, %v1861_v17  ;;  %1483 = vmatpush3.msra.mxu1 %v224_v16 }
  0xdf   :  { %v1447_v20 = vpop.f32.mrf.mxu0  ;;  %1484 = vmatprep.subr.mxu1 %v223_v19 }
  0xe0   :  { %v483_v22 = vsel %vm482_vm7, %v476_v18, 0.0  ;;  %1485 = vmatpush3.msra.mxu1 %v223_v19 }
  0xe1   :  { %v1874_v29 = vpop.f32.mrf.mxu0  ;;  %1486 = vmatprep.subr.mxu1 %v222_v23  ;;  %v485_v32 = vadd.f32 %v484_v21, %v483_v22 }
  0xe2   :  { %v480_v31 = vmul.f32 %v1874_v29, %v1874_v29  ;;  %1487 = vmatpush3.msra.mxu1 %v222_v23 }
  0xe3   :  { %v1473_v33 = vpop.f32.mrf.mxu0  ;;  %1489 = vmatmul.mubr.msk.f32.vlgmr.msra.gmra.mxu1 %vm108_vm2, %v61_v25 }
  0xe4   :  { %v486_v37 = vsel %vm482_vm7, %v480_v31, 0.0  ;;  %1491 = vmatprep.mubr.msk.f32.mxu1 %vm108_vm2, %v62_v30 }
  0xe5   :  { %v487_v42 = vadd.f32 %v486_v37, %v485_v32  ;;  %v467_v43 = vpop.f32.mrf.mxu0 }
  0xe6   :  { %v481_v46 = vmul.f32 %v467_v43, %v467_v43 }
  0xe7   :  { %v493_v48 = vadd.f32 1.0, %v487_v42  ;;  %v1476_v49 = vpop.f32.mrf.mxu0  ;;  %1492 = vmatmul.mubr.msk.f32.gmra.mxu1 %vm108_vm2, %v63_v38 }
  0xe8   :  { %v491_v54 = vsel %vm482_vm7, %v481_v46, 0.0  ;;  %1498 = vmatprep.mubr.msk.f32.mxu1 %vm226_vm1, %v79_v44 }
  0xe9   :  { %1567 = vrsqrt.f32 %v493_v48  ;;  %v472_v55 = vpop.f32.mrf.mxu0  ;;  %v492_v56 = vadd.f32 %v491_v54, %v490_v52  ;;  %vm497_vm8 = vcmp.eq.f32.partialorder %v493_v48, inf  ;;  %v500_v11 = vand.u32 2147483648, %v493_v48  ;;  %v71_v54 = vld [vmem:[%s2021_s6 + $0x18] sm:$0xff] }
  0xea   :  { %v919_v57 = vmul.f32 %v472_v55, %v472_v55  ;;  %v1900_v58 = vmul.f32 %v472_v55, %v1854_v8  ;;  %vm499_vm9 = vcmp.eq.f32.partialorder %v493_v48, 0.0 }
  0xeb   :  { %v1479_v60 = vpop.f32.mrf.mxu0  ;;  %v494_v61 = vadd.f32 1.0, %v492_v56 }
  0xec   :  { %v923_v62 = vsel %vm482_vm7, %v919_v57, 0.0 }
  0xed   :  { %v924_v63 = vadd.f32 %v923_v62, %v922_v59  ;;  %1569 = vrsqrt.f32 %v494_v61  ;;  %vm504_vm10 = vcmp.eq.f32.partialorder %v494_v61, inf  ;;  %v507_v18 = vand.u32 2147483648, %v494_v61 }
  0xee   :  { %vm506_vm11 = vcmp.eq.f32.partialorder %v494_v61, 0.0 }
  0xef   :  { %1515 = vmatprep.subr.mxu0 %v924_v63 }
  0xf0   :  { %1516 = vmatpush3.msra.mxu0 %v924_v63 }
  0xf6   :  { %v1568_v0 = vpop.eup %1567 }
  0xf7   :  { %v496_v6 = vmul.f32 %v1568_v0, %v493_v48 }
  0xf9   :  { %v498_v9 = vsel %vm497_vm8, %v493_v48, %v496_v6 }
  0xfa   :  { %v1570_v13 = vpop.eup %1569  ;;  %v501_v14 = vsel %vm499_vm9, %v500_v11, %v498_v9 }
  0xfb   :  { %v503_v16 = vmul.f32 %v1570_v13, %v494_v61  ;;  %1571 = vrsqrt.f32 %v501_v14 }
  0xfd   :  { %v505_v19 = vsel %vm504_vm10, %v494_v61, %v503_v16 }
  0xfe   :  { %v508_v20 = vsel %vm506_vm11, %v507_v18, %v505_v19 }
  0xff   :  { %1573 = vrsqrt.f32 %v508_v20 }
 0x108   :  { %v1572_v21 = vpop.eup %1571 }
 0x109   :  { %v511_v25 = vmul.f32 %v1572_v21, %v1861_v17  ;;  %v513_v30 = vmul.f32 %v1572_v21, %v1848_v45  ;;  %v515_v17 = vmul.f32 %v1572_v21, %v1874_v29  ;;  %v68_v45 = vld [vmem:[%s2021_s6] sm:$0xff] }
 0x10a   :  { %1525 = vmatprep.mubr.msk.f32.mxu0 %vm948_vm12, %v68_v45  ;;  %v1925_v29 = vld [vmem:[%s2022_s10] sm:$0xff] }
 0x10c   :  { %v1574_v22 = vpop.eup %1573 }
 0x10d   :  { %v512_v23 = vmul.f32 %v1574_v22, %v1844_v35  ;;  %v514_v28 = vmul.f32 %v1574_v22, %v1852_v51  ;;  %v516_v35 = vmul.f32 %v1574_v22, %v467_v43  ;;  %v925_v51 = vmul.f32 %v1846_v40, %v1854_v8  ;;  %v535_v40 = vpop.permute.xlu0 %534 }
 0x10f   :  { %1494 = vmatprep.subr.mxu1 %v512_v23 }
 0x110   :  { %1495 = vmatpush3.msra.mxu1 %v512_v23 }
 0x111   :  { %1496 = vmatprep.subr.mxu1 %v511_v25  ;;  %v525_v8 = vpop.permute.xlu0 %524 }
 0x112   :  { %1497 = vmatpush3.msra.mxu1 %v511_v25 }
 0x113   :  { %1499 = vmatmul.mubr.msk.f32.vlgmr.msra.gmra.mxu1 %vm226_vm1, %v80_v27  ;;  %1501 = vmatprep.subr.mxu1 %v514_v28 }
 0x114   :  { %1502 = vmatpush3.msra.mxu1 %v514_v28  ;;  %1505 = vmatprep.mubr.msk.f32.mxu1 %vm226_vm1, %v79_v44 }
 0x115   :  { %1503 = vmatprep.subr.mxu1 %v513_v30  ;;  %v520_v37 = vpop.permute.xlu0 %519 }
 0x116   :  { %1504 = vmatpush3.msra.mxu1 %v513_v30 }
 0x117   :  { %1506 = vmatmul.mubr.msk.f32.vlgmr.msra.gmra.mxu1 %vm226_vm1, %v80_v27  ;;  %1508 = vmatprep.subr.mxu1 %v516_v35 }
 0x118   :  { %1509 = vmatpush3.msra.mxu1 %v516_v35  ;;  %1512 = vmatprep.mubr.msk.f32.mxu1 %vm226_vm1, %v79_v44 }
 0x119   :  { %1510 = vmatprep.subr.mxu1 %v515_v17 }
 0x11a   :  { %1511 = vmatpush3.msra.mxu1 %v515_v17 }
 0x11b   :  { %1513 = vmatmul.mubr.msk.f32.vlgmr.msra.gmra.mxu1 %vm226_vm1, %v80_v27  ;;  %1531 = vmatprep.subr.mxu1 %v925_v51 }
 0x11c   :  { %1532 = vmatpush3.msra.mxu1 %v925_v51  ;;  %1537 = vmatprep.mubr.msk.f32.mxu1 %vm1046_vm13, %v1925_v29 }
 0x1a3   :  { %v1490_v31 = vpop.f32.mrf.mxu1 }
 0x1a4   :  { %v621_v34 = vadd.f32 %v1490_v31, %v525_v8 }
 0x1a5   :  { %v615_v32 = vpop.f32.mrf.mxu1 }
 0x1a6   :  { %v616_v39 = vadd.f32 %v615_v32, %v520_v37  ;;  %v639_v43 = vmul.f32 0.2, %v621_v34  ;;  %vm635_vm0 = vcmp.ge.f32.partialorder %v621_v34, 0.0 }
 0x1a7   :  { %v1493_v33 = vpop.f32.mrf.mxu1 }
 0x1a8   :  { %v631_v36 = vadd.f32 %v1493_v33, %v535_v40  ;;  %v638_v48 = vmul.f32 0.2, %v616_v39  ;;  %vm634_vm1 = vcmp.ge.f32.partialorder %v616_v39, 0.0  ;;  %v643_v50 = vsel %vm635_vm0, %v621_v34, %v639_v43 }
 0x1a9   :  { %v625_v38 = vpop.f32.mrf.mxu1 }
 0x1aa   :  { %v641_v41 = vmul.f32 0.2, %v631_v36  ;;  %v626_v42 = vadd.f32 %v625_v38, %v1850_v47  ;;  %vm637_vm14 = vcmp.ge.f32.partialorder %v631_v36, 0.0  ;;  %v642_v52 = vsel %vm634_vm1, %v616_v39, %v638_v48  ;;  %v69_v47 = vld [vmem:[%s2021_s6 + $0x8] sm:$0xff] }
 0x1ac   :  { %v640_v44 = vmul.f32 0.2, %v626_v42  ;;  %v645_v46 = vsel %vm637_vm14, %v631_v36, %v641_v41  ;;  %vm636_vm15 = vcmp.ge.f32.partialorder %v626_v42, 0.0  ;;  %v82_v41 = vld [vmem:[%s2022_s10 + $0x8] sm:$0xff] }
 0x1ad   :  { %1517 = vmatprep.subr.mxu0 %v645_v46 }
 0x1ae   :  { %1518 = vmatpush3.msra.mxu0 %v645_v46  ;;  %v644_v49 = vsel %vm636_vm15, %v626_v42, %v640_v44  ;;  %v936_v44 = vpop.permute.xlu0 %935  ;;  %v931_v46 = vpop.permute.xlu1 %930 }
 0x1af   :  { %1519 = vmatprep.subr.mxu0 %v644_v49 }
 0x1b0   :  { %1520 = vmatpush3.msra.mxu0 %v644_v49 }
 0x1b1   :  { %1521 = vmatprep.subr.mxu0 %v643_v50 }
 0x1b2   :  { %1522 = vmatpush3.msra.mxu0 %v643_v50 }
 0x1b3   :  { %1523 = vmatprep.subr.mxu0 %v642_v52 }
 0x1b4   :  { %1524 = vmatpush3.msra.mxu0 %v642_v52 }
 0x1b5   :  { %1526 = vmatmul.mubr.msk.f32.vlgmr.msra.gmra.mxu0 %vm948_vm12, %v69_v47  ;;  %1549 = vmatprep.subr.mxu0 %v1900_v58 }
 0x1b6   :  { %1550 = vmatpush3.msra.mxu0 %v1900_v58  ;;  %1528 = vmatprep.mubr.msk.f32.mxu0 %vm948_vm12, %v70_v53 }
 0x1b9   :  { %1529 = vmatmul.mubr.msk.f32.gmra.mxu0 %vm948_vm12, %v71_v54 }
 0x1ba   :  { %1555 = vmatprep.mubr.msk.f32.mxu0 %vm1046_vm13, %v1925_v29 }
 0x1d3   :  { %v1500_v55 = vpop.f32.mrf.mxu1 }
 0x1d4   :  { %v878_v59 = vmul.f32 %v1500_v55, %v1500_v55 }
 0x1d5   :  { %v718_v56 = vpop.f32.mrf.mxu1 }
 0x1d6   :  { %v877_v62 = vmul.f32 %v718_v56, %v718_v56  ;;  %v888_v6 = vsel %vm482_vm7, %v878_v59, 0.0 }
 0x1d7   :  { %v1507_v57 = vpop.f32.mrf.mxu1 }
 0x1d8   :  { %v880_v60 = vmul.f32 %v1507_v57, %v1507_v57  ;;  %v883_v16 = vsel %vm482_vm7, %v877_v62, 0.0 }
 0x1d9   :  { %v793_v61 = vpop.f32.mrf.mxu1 }
 0x1da   :  { %v889_v58 = vsel %vm482_vm7, %v880_v60, 0.0  ;;  %v879_v63 = vmul.f32 %v793_v61, %v793_v61 }
 0x1db   :  { %v1514_v0 = vpop.f32.mrf.mxu1  ;;  %v890_v13 = vadd.f32 %v889_v58, %v888_v6 }
 0x1dc   :  { %v884_v9 = vsel %vm482_vm7, %v879_v63, 0.0  ;;  %v882_v11 = vmul.f32 %v1514_v0, %v1514_v0 }
 0x1dd   :  { %v868_v14 = vpop.f32.mrf.mxu1  ;;  %v885_v20 = vadd.f32 %v884_v9, %v883_v16 }
 0x1de   :  { %v891_v18 = vsel %vm482_vm7, %v882_v11, 0.0  ;;  %v881_v19 = vmul.f32 %v868_v14, %v868_v14 }
 0x1df   :  { %v892_v21 = vadd.f32 %v891_v18, %v890_v13 }
 0x1e0   :  { %v886_v22 = vsel %vm482_vm7, %v881_v19, 0.0 }
 0x1e1   :  { %v894_v23 = vadd.f32 1.0, %v892_v21  ;;  %v887_v25 = vadd.f32 %v886_v22, %v885_v20 }
 0x1e3   :  { %1575 = vrsqrt.f32 %v894_v23  ;;  %v893_v27 = vadd.f32 1.0, %v887_v25  ;;  %vm904_vm2 = vcmp.eq.f32.partialorder %v894_v23, inf  ;;  %v907_v35 = vand.u32 2147483648, %v894_v23 }
 0x1e4   :  { %vm906_vm3 = vcmp.eq.f32.partialorder %v894_v23, 0.0 }
 0x1e5   :  { %1577 = vrsqrt.f32 %v893_v27  ;;  %vm897_vm4 = vcmp.eq.f32.partialorder %v893_v27, inf  ;;  %v900_v8 = vand.u32 2147483648, %v893_v27  ;;  %vm899_vm5 = vcmp.eq.f32.partialorder %v893_v27, 0.0 }
 0x1f0   :  { %v1576_v28 = vpop.eup %1575 }
 0x1f1   :  { %v903_v30 = vmul.f32 %v1576_v28, %v894_v23 }
 0x1f2   :  { %v1578_v17 = vpop.eup %1577 }
 0x1f3   :  { %v905_v51 = vsel %vm904_vm2, %v894_v23, %v903_v30  ;;  %v896_v40 = vmul.f32 %v1578_v17, %v893_v27 }
 0x1f4   :  { %v908_v45 = vsel %vm906_vm3, %v907_v35, %v905_v51 }
 0x1f5   :  { %1579 = vrsqrt.f32 %v908_v45  ;;  %v898_v31 = vsel %vm897_vm4, %v893_v27, %v896_v40 }
 0x1f6   :  { %v901_v32 = vsel %vm899_vm5, %v900_v8, %v898_v31 }
 0x1f7   :  { %1581 = vrsqrt.f32 %v901_v32 }
 0x202   :  { %v1580_v33 = vpop.eup %1579 }
 0x203   :  { %v916_v34 = vmul.f32 %v1580_v33, %v1514_v0  ;;  %v912_v36 = vmul.f32 %v1580_v33, %v1500_v55  ;;  %v914_v42 = vmul.f32 %v1580_v33, %v1507_v57 }
 0x204   :  { %v1582_v37 = vpop.eup %1581 }
 0x205   :  { %1533 = vmatprep.subr.mxu1 %v912_v36  ;;  %1551 = vmatprep.subr.mxu0 %v916_v34  ;;  %v915_v38 = vmul.f32 %v1582_v37, %v868_v14  ;;  %v911_v39 = vmul.f32 %v1582_v37, %v718_v56  ;;  %v913_v43 = vmul.f32 %v1582_v37, %v793_v61  ;;  %v941_v56 = vpop.permute.xlu1 %940 }
 0x206   :  { %1534 = vmatpush3.msra.mxu1 %v912_v36  ;;  %1552 = vmatpush3.msra.mxu0 %v916_v34 }
 0x207   :  { %1535 = vmatprep.subr.mxu1 %v911_v39  ;;  %1553 = vmatprep.subr.mxu0 %v915_v38 }
 0x208   :  { %1536 = vmatpush3.msra.mxu1 %v911_v39  ;;  %1554 = vmatpush3.msra.mxu0 %v915_v38 }
 0x209   :  { %1540 = vmatprep.subr.mxu1 %v1859_v15  ;;  %1538 = vmatmul.mubr.msk.f32.vlgmr.msra.gmra.mxu1 %vm1046_vm13, %v82_v41 }
 0x20a   :  { %1541 = vmatpush3.msra.mxu1 %v1859_v15  ;;  %1546 = vmatprep.mubr.msk.f32.mxu1 %vm1046_vm13, %v1925_v29  ;;  %v946_v15 = vpop.permute.xlu0 %945 }
 0x20b   :  { %1542 = vmatprep.subr.mxu1 %v914_v42  ;;  %1556 = vmatmul.mubr.msk.f32.vlgmr.msra.gmra.mxu0 %vm1046_vm13, %v82_v41 }
 0x20c   :  { %1543 = vmatpush3.msra.mxu1 %v914_v42 }
 0x20d   :  { %1544 = vmatprep.subr.mxu1 %v913_v43 }
 0x20e   :  { %1545 = vmatpush3.msra.mxu1 %v913_v43 }
 0x20f   :  { %1547 = vmatmul.mubr.msk.f32.vlgmr.msra.gmra.mxu1 %vm1046_vm13, %v82_v41 }
 0x275   :  { %v1527_v48 = vpop.f32.mrf.mxu0 }
 0x276   :  { %v1033_v49 = vadd.f32 %v1527_v48, %v936_v44 }
 0x277   :  { %v1027_v50 = vpop.f32.mrf.mxu0 }
 0x278   :  { %v1279_v52 = vmul.f32 0.5, %v1033_v49  ;;  %v1028_v47 = vadd.f32 %v1027_v50, %v931_v46 }
 0x279   :  { %v1530_v53 = vpop.f32.mrf.mxu0 }
 0x27a   :  { %v1283_v29 = vadd.f32 %v1279_v52, %v1675_v4  ;;  %v1278_v54 = vmul.f32 0.5, %v1028_v47  ;;  %v1043_v55 = vadd.f32 %v1530_v53, %v946_v15 }
 0x27b   :  { %v1037_v57 = vpop.f32.mrf.mxu0 }
 0x27c   :  { %1287 = vst.msk [vmem:[%s2023_s11 + $0x8] sm:$0xff] %vm482_vm7, %v1283_v29  ;;  %v1282_v59 = vadd.f32 %v1278_v54, %v1694_v7  ;;  %v1281_v60 = vmul.f32 0.5, %v1043_v55  ;;  %v1038_v61 = vadd.f32 %v1037_v57, %v941_v56 }
 0x27e   :  { %1286 = vst.msk [vmem:[%s2023_s11] sm:$0xff] %vm482_vm7, %v1282_v59  ;;  %v1285_v4 = vadd.f32 %v1281_v60, %v1655_v1  ;;  %v1280_v62 = vmul.f32 0.5, %v1038_v61 }
 0x280   :  { %1289 = vst.msk [vmem:[%s2023_s11 + $0x18] sm:$0xff] %vm482_vm7, %v1285_v4  ;;  %v1284_v58 = vadd.f32 %v1280_v62, %v1660_v2 }
 0x282   :  { %1288 = vst.msk [vmem:[%s2023_s11 + $0x10] sm:$0xff] %vm482_vm7, %v1284_v58 }
 0x2c9   :  { %v1539_v7 = vpop.f32.mrf.mxu1 }
 0x2ca   :  { %v1291_v63 = vmul.f32 0.05, %v1539_v7 }
 0x2cb   :  { %v1119_v0 = vpop.f32.mrf.mxu1  ;;  %v1557_v6 = vpop.f32.mrf.mxu0 }
 0x2cc   :  { %v1297_v9 = vadd.f32 %v1291_v63, %v1669_v3  ;;  %v1290_v1 = vmul.f32 0.05, %v1119_v0  ;;  %v1295_v11 = vmul.f32 0.05, %v1557_v6 }
 0x2cd   :  { %v1269_v13 = vpop.f32.mrf.mxu0 }
 0x2ce   :  { %1303 = vst.msk [vmem:[%s2024_s12 + $0x8] sm:$0xff] %vm482_vm7, %v1297_v9  ;;  %v1296_v2 = vadd.f32 %v1290_v1, %v1681_v5  ;;  %v1301_v14 = vadd.f32 %v1295_v11, %v1797_v24  ;;  %v1294_v16 = vmul.f32 0.05, %v1269_v13 }
 0x2cf   :  { %v1548_v18 = vpop.f32.mrf.mxu1 }
 0x2d0   :  { %1302 = vst.msk [vmem:[%s2024_s12] sm:$0xff] %vm482_vm7, %v1296_v2  ;;  %v1293_v3 = vmul.f32 0.05, %v1548_v18  ;;  %1307 = vst.msk [vmem:[%s2024_s12 + $0x28] sm:$0xff] %vm482_vm7, %v1301_v14  ;;  %v1300_v19 = vadd.f32 %v1294_v16, %v1806_v26 }
 0x2d1   :  { %v1194_v20 = vpop.f32.mrf.mxu1 }
 0x2d2   :  { %v1299_v5 = vadd.f32 %v1293_v3, %v1719_v10  ;;  %v1292_v21 = vmul.f32 0.05, %v1194_v20  ;;  %1306 = vst.msk [vmem:[%s2024_s12 + $0x20] sm:$0xff] %vm482_vm7, %v1300_v19 }
 0x2d4   :  { %1305 = vst.msk [vmem:[%s2024_s12 + $0x18] sm:$0xff] %vm482_vm7, %v1299_v5  ;;  %v1298_v24 = vadd.f32 %v1292_v21, %v1733_v12 }
 0x2d6   :  { %1304 = vst.msk [vmem:[%s2024_s12 + $0x10] sm:$0xff] %vm482_vm7, %v1298_v24 }

</bundles_post_ra>
